<compile_context>
chip_gen: v5e
topology: v5e:2x2
jax: 0.10.0
libtpu: 0.0.40
codegen_flags: <defaults>
</compile_context>

<pallas_src>
import functools
import math

import jax
import jax.numpy as jnp
from jax import lax
from jax.experimental import pallas as pl
from jax.experimental.pallas import tpu as pltpu

F32 = jnp.float32
BF16 = jnp.bfloat16

# TODO(synk): `obj` / `n_bins` dicts are not provided in the source; small
# representative head sets are used (38 distance bins matches RecyclingEmbedder's Linear(38, dim)).
OBJ_2D = {'distance': ['PP', 'CC', 'NN'], 'contact': ['CC']}
N_BINS_2D = {'distance': 38, 'contact': 1}

_ROW_TILE = 2048        # row tile for matmul-style kernels (narrow D -> big tiles)
_ROW_TILE_ELEM = 2048   # row tile for elementwise / norm kernels
_MM_ROW_TILE = 512      # row tile for the f32 statistics matmuls (get_f2d)
_MM_COL_TILE = 512      # column tile for the f32 statistics matmuls


# --------------------------------------------------------------------------
# Small helpers
# --------------------------------------------------------------------------
def _prod(shape):
    out = 1
    for s in shape:
        out *= int(s)
    return out


def _round_up(x, m):
    return ((x + m - 1) // m) * m


def _row_tiling(M, target, mult=8):
    """Return (tile, n_blocks, padded_M).  tile is a multiple of `mult`.
    Prefers an exact divisor of M near `target`; otherwise pads M up (callers
    zero-pad the rows and slice the result), so we never silently fall back to
    a single full-array VMEM block."""
    target = max(mult, (target // mult) * mult)
    if M <= target:
        T = _round_up(M, mult)
        return T, 1, T
    t = target
    while t >= max(mult, target // 2):
        if M % t == 0:
            return t, M // t, M
        t -= mult
    T = target
    Mp = _round_up(M, T)
    return T, Mp // T, Mp


def _pad_rows(x2, Mp):
    M = x2.shape[0]
    if Mp == M:
        return x2
    return jnp.pad(x2, ((0, Mp - M), (0, 0)))


def _const_spec(shape):
    nd = len(shape)
    return pl.BlockSpec(shape, lambda *_: (0,) * nd)


# --------------------------------------------------------------------------
# Fused linear (pre-act / LN / InstanceNorm-affine+ELU -> bf16 matmul -> act -> +res)
# --------------------------------------------------------------------------
@functools.lru_cache(maxsize=None)
def _get_linear_kernel(has_ln, has_aff, pre_relu, pre_elu, act, has_res):
    def kernel(*refs):
        it = iter(refs)
        x = next(it)[...].astype(F32)
        if pre_relu:                               # ReLU before the (optional) LN
            x = jnp.maximum(x, 0.0)
        if has_ln:                                 # LayerNorm(eps=1e-5) fused in
            g = next(it)[...]
            be = next(it)[...]
            mu = jnp.mean(x, axis=-1, keepdims=True)
            var = jnp.mean(jnp.square(x - mu), axis=-1, keepdims=True)
            x = (x - mu) * lax.rsqrt(var + 1e-5) * g + be
        if has_aff:                                # InstanceNorm2d(affine)+ELU as x*scale+shift
            sc = next(it)[...]
            sh = next(it)[...]
            x = x * sc + sh
            x = jnp.where(x > 0, x, jnp.expm1(x))
        if pre_elu:                                # plain ELU(alpha=1)
            x = jnp.where(x > 0, x, jnp.expm1(x))
        w = next(it)[...]
        b = next(it)[...]
        y = jnp.dot(x.astype(BF16), w, preferred_element_type=F32) + b
        if act == 'gelu':
            y = jax.nn.gelu(y, approximate=True)
        elif act == 'relu':
            y = jnp.maximum(y, 0.0)
        if has_res:
            y = y + next(it)[...].astype(F32)
        o_ref = next(it)
        o_ref[...] = y.astype(o_ref.dtype)
    return kernel


def fused_linear(x, w, b, *, ln=None, affine=None, pre_relu=False, pre_elu=False,
                 act=None, residual=None, out_dtype=F32, row_tile=_ROW_TILE):
    """y = act(f(x) @ W + b) [+ residual], gridded over row tiles ("parallel").
    f(x) = [ReLU] -> [LayerNorm] -> [InstanceNorm-affine + ELU] -> [ELU]."""
    din = x.shape[-1]
    dout = w.shape[-1]
    lead = x.shape[:-1]
    M = _prod(lead)
    TM, nblk, Mp = _row_tiling(M, row_tile, 8)
    x2 = _pad_rows(x.reshape(M, din), Mp)

    ins = [x2]
    specs = [pl.BlockSpec((TM, din), lambda i: (i, 0))]
    if ln is not None:
        ins += [ln['g'].reshape(1, din).astype(F32), ln['b'].reshape(1, din).astype(F32)]
        specs += [_const_spec((1, din)), _const_spec((1, din))]
    if affine is not None:
        sc, sh = affine
        ins += [sc.reshape(1, din).astype(F32), sh.reshape(1, din).astype(F32)]
        specs += [_const_spec((1, din)), _const_spec((1, din))]
    ins += [w.astype(BF16), b.reshape(1, dout).astype(F32)]
    specs += [_const_spec((din, dout)), _const_spec((1, dout))]
    if residual is not None:
        ins.append(_pad_rows(residual.reshape(M, dout), Mp))
        specs.append(pl.BlockSpec((TM, dout), lambda i: (i, 0)))

    kern = _get_linear_kernel(ln is not None, affine is not None, pre_relu, pre_elu,
                              act, residual is not None)
    out = pl.pallas_call(
        kern,
        grid=(nblk,),
        in_specs=specs,
        out_specs=pl.BlockSpec((TM, dout), lambda i: (i, 0)),
        out_shape=jax.ShapeDtypeStruct((Mp, dout), out_dtype),
        compiler_params=pltpu.CompilerParams(dimension_semantics=("parallel",)),
    )(*ins)
    if Mp > M:
        out = out[:M]
    return out.reshape(lead + (dout,))


# --------------------------------------------------------------------------
# Fused transition / FFN: x + l2(gelu(l1(LN(x)))), one kernel, row tiled
# --------------------------------------------------------------------------
def _ffn_kernel(x_ref, g_ref, be_ref, w1_ref, b1_ref, w2_ref, b2_ref, o_ref):
    x = x_ref[...].astype(F32)
    mu = jnp.mean(x, axis=-1, keepdims=True)
    var = jnp.mean(jnp.square(x - mu), axis=-1, keepdims=True)
    h = (x - mu) * lax.rsqrt(var + 1e-5) * g_ref[...] + be_ref[...]
    h = jnp.dot(h.astype(BF16), w1_ref[...], preferred_element_type=F32) + b1_ref[...]
    h = jax.nn.gelu(h, approximate=True)
    y = jnp.dot(h.astype(BF16), w2_ref[...], preferred_element_type=F32) + b2_ref[...]
    o_ref[...] = (x + y).astype(o_ref.dtype)


def ffn_block(x, f, out_dtype=F32, row_tile=_ROW_TILE):
    D = x.shape[-1]
    Dh = f['l1']['w'].shape[-1]
    lead = x.shape[:-1]
    M = _prod(lead)
    TM, nblk, Mp = _row_tiling(M, row_tile, 8)
    x2 = _pad_rows(x.reshape(M, D), Mp)
    out = pl.pallas_call(
        _ffn_kernel,
        grid=(nblk,),
        in_specs=[pl.BlockSpec((TM, D), lambda i: (i, 0)),
                  _const_spec((1, D)), _const_spec((1, D)),
                  _const_spec((D, Dh)), _const_spec((1, Dh)),
                  _const_spec((Dh, D)), _const_spec((1, D))],
        out_specs=pl.BlockSpec((TM, D), lambda i: (i, 0)),
        out_shape=jax.ShapeDtypeStruct((Mp, D), out_dtype),
        compiler_params=pltpu.CompilerParams(dimension_semantics=("parallel",)),
    )(x2, f['ln']['g'].reshape(1, D).astype(F32), f['ln']['b'].reshape(1, D).astype(F32),
      f['l1']['w'].astype(BF16), f['l1']['b'].reshape(1, Dh).astype(F32),
      f['l2']['w'].astype(BF16), f['l2']['b'].reshape(1, D).astype(F32))
    if Mp > M:
        out = out[:M]
    return out.reshape(x.shape)


# --------------------------------------------------------------------------
# Generic gridded f32 matmul (rows AND columns tiled; used by the get_f2d
# statistics path which must stay f32)
# --------------------------------------------------------------------------
@functools.lru_cache(maxsize=None)
def _get_matmul_kernel(scale):
    def kernel(a_ref, b_ref, o_ref):
        y = jnp.dot(a_ref[...], b_ref[...], preferred_element_type=F32)
        if scale != 1.0:
            y = y * scale
        o_ref[...] = y.astype(o_ref.dtype)
    return kernel


def matmul(a, b, *, scale=1.0, out_dtype=F32,
           row_tile=_MM_ROW_TILE, col_tile=_MM_COL_TILE):
    M, K = a.shape
    N = b.shape[1]
    TM, gm, Mp = _row_tiling(M, row_tile, 8)
    TN, gn, Np = _row_tiling(N, col_tile, 128)
    a2 = _pad_rows(a, Mp)
    b2 = b if Np == N else jnp.pad(b, ((0, 0), (0, Np - N)))
    out = pl.pallas_call(
        _get_matmul_kernel(float(scale)),
        grid=(gm, gn),
        in_specs=[pl.BlockSpec((TM, K), lambda i, j: (i, 0)),
                  pl.BlockSpec((K, TN), lambda i, j: (0, j))],
        out_specs=pl.BlockSpec((TM, TN), lambda i, j: (i, j)),
        out_shape=jax.ShapeDtypeStruct((Mp, Np), out_dtype),
        compiler_params=pltpu.CompilerParams(dimension_semantics=("parallel", "parallel")),
    )(a2, b2)
    if Mp > M or Np > N:
        out = out[:M, :N]
    return out


# --------------------------------------------------------------------------
# Row-tiled LayerNorm / softmax / InstanceNorm statistics
# --------------------------------------------------------------------------
def _layernorm_kernel(x_ref, g_ref, b_ref, o_ref):
    x = x_ref[...].astype(F32)
    mu = jnp.mean(x, axis=-1, keepdims=True)
    var = jnp.mean(jnp.square(x - mu), axis=-1, keepdims=True)
    o_ref[...] = ((x - mu) * lax.rsqrt(var + 1e-5) * g_ref[...] + b_ref[...]).astype(o_ref.dtype)


def layernorm(x, prm, out_dtype=F32, row_tile=_ROW_TILE_ELEM):
    D = x.shape[-1]
    M = _prod(x.shape[:-1])
    TM, nblk, Mp = _row_tiling(M, row_tile, 8)
    x2 = _pad_rows(x.reshape(M, D), Mp)
    out = pl.pallas_call(
        _layernorm_kernel,
        grid=(nblk,),
        in_specs=[pl.BlockSpec((TM, D), lambda i: (i, 0)),
                  _const_spec((1, D)), _const_spec((1, D))],
        out_specs=pl.BlockSpec((TM, D), lambda i: (i, 0)),
        out_shape=jax.ShapeDtypeStruct((Mp, D), out_dtype),
        compiler_params=pltpu.CompilerParams(dimension_semantics=("parallel",)),
    )(x2, prm['g'].reshape(1, D).astype(F32), prm['b'].reshape(1, D).astype(F32))
    if Mp > M:
        out = out[:M]
    return out.reshape(x.shape)


def _softmax_kernel(x_ref, o_ref):
    x = x_ref[...].astype(F32)
    m = jnp.max(x, axis=-1, keepdims=True)
    e = jnp.exp(x - m)
    o_ref[...] = e * pl.reciprocal(jnp.sum(e, axis=-1, keepdims=True), approx=True)


def softmax_last(x, row_tile=_ROW_TILE_ELEM):
    D = x.shape[-1]
    M = _prod(x.shape[:-1])
    TM, nblk, Mp = _row_tiling(M, row_tile, 8)
    x2 = _pad_rows(x.reshape(M, D), Mp)
    out = pl.pallas_call(
        _softmax_kernel,
        grid=(nblk,),
        in_specs=[pl.BlockSpec((TM, D), lambda i: (i, 0))],
        out_specs=pl.BlockSpec((TM, D), lambda i: (i, 0)),
        out_shape=jax.ShapeDtypeStruct((Mp, D), F32),
        compiler_params=pltpu.CompilerParams(dimension_semantics=("parallel",)),
    )(x2)
    if Mp > M:
        out = out[:M]
    return out.reshape(x.shape)


@functools.lru_cache(maxsize=None)
def _get_chanstat_kernel(TM, M_true):
    def kernel(x_ref, s_ref, ss_ref, q_ref):
        i = pl.program_id(0)

        @pl.when(i == 0)
        def _():
            s_ref[...] = jnp.zeros_like(s_ref)
            ss_ref[...] = jnp.zeros_like(ss_ref)
            q_ref[...] = jnp.zeros_like(q_ref)

        x = x_ref[...].astype(F32)
        row = lax.broadcasted_iota(jnp.int32, (TM, 1), 0) + i * TM
        valid = row < M_true
        cnt = jnp.minimum(TM, M_true - i * TM).astype(F32)
        xm = jnp.where(valid, x, 0.0)
        s = jnp.sum(xm, axis=0, keepdims=True)
        mu = s / cnt
        d = jnp.where(valid, x - mu, 0.0)
        s_ref[...] += s
        ss_ref[...] += jnp.sum(d * d, axis=0, keepdims=True)
        q_ref[...] += cnt * mu * mu
    return kernel


def instnorm_affine(x, prm, eps=1e-5, row_tile=_ROW_TILE_ELEM):
    """Per-channel (scale, shift) so that InstanceNorm2d(affine)(x) == x*scale+shift.
    Uses per-block-shifted sums (parallel-variance combine) instead of
    E[x^2]-E[x]^2 for better f32 numerics.  Accumulator outputs stay resident
    across the sequential 'arbitrary' grid (must NOT be marked parallel)."""
    C = x.shape[-1]
    M = _prod(x.shape[:-1])
    TM, nblk, Mp = _row_tiling(M, row_tile, 8)
    x2 = _pad_rows(x.reshape(M, C), Mp)
    s, ss, q = pl.pallas_call(
        _get_chanstat_kernel(TM, M),
        grid=(nblk,),
        in_specs=[pl.BlockSpec((TM, C), lambda i: (i, 0))],
        out_specs=(pl.BlockSpec((1, C), lambda i: (0, 0)),
                   pl.BlockSpec((1, C), lambda i: (0, 0)),
                   pl.BlockSpec((1, C), lambda i: (0, 0))),
        out_shape=(jax.ShapeDtypeStruct((1, C), F32),
                   jax.ShapeDtypeStruct((1, C), F32),
                   jax.ShapeDtypeStruct((1, C), F32)),
        compiler_params=pltpu.CompilerParams(dimension_semantics=("arbitrary",)),
    )(x2)
    mean = s[0] / M
    var = jnp.maximum((ss[0] + q[0]) / M - mean * mean, 0.0)
    rstd = lax.rsqrt(var + eps)
    scale = prm['g'] * rstd
    shift = prm['b'] - mean * scale
    return scale, shift


# --------------------------------------------------------------------------
# Attention: grid over rows (B) only; ALL heads per step sliced from the fused
# QKV layout; optional pair bias is a grid-constant bf16 block.
# --------------------------------------------------------------------------
@functools.lru_cache(maxsize=None)
def _get_attn_kernel(H, dh, scale, has_bias):
    Hdh = H * dh

    def kernel(*refs):
        if has_bias:
            qkv_ref, b_ref, o_ref = refs
        else:
            qkv_ref, o_ref = refs
        qkv = qkv_ref[0]                                    # (L, 3*H*dh)
        outs = []
        for h in range(H):
            q = qkv[:, h * dh:(h + 1) * dh]
            k = qkv[:, Hdh + h * dh:Hdh + (h + 1) * dh]
            v = qkv[:, 2 * Hdh + h * dh:2 * Hdh + (h + 1) * dh]
            s = lax.dot_general(q, k, (((1,), (1,)), ((), ())),
                                preferred_element_type=F32) * scale
            if has_bias:
                s = s + b_ref[h].astype(F32)
            s = s - jnp.max(s, axis=-1, keepdims=True)
            p = jnp.exp(s)
            denom = jnp.sum(p, axis=-1, keepdims=True)
            o = lax.dot_general(p.astype(BF16), v, (((1,), (0,)), ((), ())),
                                preferred_element_type=F32)
            outs.append(o * pl.reciprocal(denom, approx=True))
        o_ref[0] = jnp.concatenate(outs, axis=-1).astype(o_ref.dtype)
    return kernel


def attention(qkv, heads, dim_head, scale, bias=None, out_dtype=BF16):
    """qkv: (B, L, 3*H*dh) fused [Q_h...|K_h...|V_h...] layout.
    Optional bias: (H, L, L), shared across all B rows (fetched once)."""
    B, L, _ = qkv.shape
    Hdh = heads * dim_head
    ins = [qkv]
    specs = [pl.BlockSpec((1, L, 3 * Hdh), lambda b: (b, 0, 0))]
    if bias is not None:
        ins.append(bias.astype(BF16))
        specs.append(pl.BlockSpec(bias.shape, lambda b: (0, 0, 0)))
    return pl.pallas_call(
        _get_attn_kernel(heads, dim_head, float(scale), bias is not None),
        grid=(B,),
        in_specs=specs,
        out_specs=pl.BlockSpec((1, L, Hdh), lambda b: (b, 0, 0)),
        out_shape=jax.ShapeDtypeStruct((B, L, Hdh), out_dtype),
        compiler_params=pltpu.CompilerParams(dimension_semantics=("parallel",)),
    )(*ins)


# --------------------------------------------------------------------------
# Outer-product-mean: emit (L*L, c*c) directly (no HBM reshuffles)
# --------------------------------------------------------------------------
@functools.lru_cache(maxsize=None)
def _get_opm_kernel(TI, L, c, inv_n):
    def kernel(a_ref, bT_ref, o_ref):
        bT = bT_ref[...]                                    # (L*c, N)
        for idx in range(TI):
            a_i = a_ref[:, idx * c:(idx + 1) * c]           # (N, c)
            y = jnp.dot(bT, a_i, preferred_element_type=F32)   # (L*c, c) rows (j,q), cols p
            y = y.reshape(L, c * c) * inv_n                 # lanes = q*c + p
            o_ref[pl.ds(idx * L, L), :] = y.astype(o_ref.dtype)
    return kernel


def opm_outer_mean(aa, bb, out_dtype=BF16):
    """out[i*L+j, q*c+p] = (1/N) sum_n aa[n,i,p]*bb[n,j,q].
    (Lane ordering q*c+p; the projection weight that follows is defined against
    this layout - the OPM block is our own Evoformer-style assumption.)"""
    N, L, c = aa.shape
    TI = max(1, 128 // math.gcd(c, 128))
    while (TI * c) % 128 != 0 or (TI * L) % 8 != 0:
        TI *= 2
    Lp = _round_up(L, TI)
    aa2 = aa.reshape(N, L * c).astype(BF16)
    if Lp > L:
        aa2 = jnp.pad(aa2, ((0, 0), (0, (Lp - L) * c)))
    bbT = bb.reshape(N, L * c).T.astype(BF16)               # (L*c, N)
    out = pl.pallas_call(
        _get_opm_kernel(TI, L, c, 1.0 / N),
        grid=(Lp // TI,),
        in_specs=[pl.BlockSpec((N, TI * c), lambda i: (0, i)),
                  _const_spec((L * c, N))],
        out_specs=pl.BlockSpec((TI * L, c * c), lambda i: (i, 0)),
        out_shape=jax.ShapeDtypeStruct((Lp * L, c * c), out_dtype),
        compiler_params=pltpu.CompilerParams(dimension_semantics=("parallel",)),
    )(aa2, bbT)
    return out[:L * L]


# --------------------------------------------------------------------------
# Halo-tiled 3x3 conv: double-buffered bf16 slab DMA, fused IN-affine + ELU,
# local f32 accumulator over the 9 taps, single store.
# --------------------------------------------------------------------------
def _pick_conv_tile(L, target):
    cands = [t for t in range(1, min(L, target) + 1)
             if L % t == 0 and (t * L) % 8 == 0]
    return max(cands) if cands else L


@functools.lru_cache(maxsize=None)
def _get_conv3x3_kernel(TI, L, C, Cout, has_res):
    def kernel(*refs):
        if has_res:
            xp_hbm, w_ref, b_ref, sc_ref, sh_ref, res_ref, o_ref, xbuf, sem = refs
        else:
            xp_hbm, w_ref, b_ref, sc_ref, sh_ref, o_ref, xbuf, sem = refs
        i = pl.program_id(0)
        nsteps = pl.num_programs(0)
        slot = i % 2

        @pl.when(i == 0)
        def _():
            pltpu.make_async_copy(xp_hbm.at[pl.ds(0, TI + 2)],
                                  xbuf.at[0], sem.at[0]).start()

        # wait for the slab of the current step
        pltpu.make_async_copy(xp_hbm.at[pl.ds(i * TI, TI + 2)],
                              xbuf.at[slot], sem.at[slot]).wait()

        @pl.when(i + 1 < nsteps)
        def _():
            nslot = 1 - slot
            pltpu.make_async_copy(xp_hbm.at[pl.ds((i + 1) * TI, TI + 2)],
                                  xbuf.at[nslot], sem.at[nslot]).start()

        # InstanceNorm affine + ELU fused in; zero-pad halo synthesized by mask.
        slab = xbuf[slot].astype(F32)                           # (TI+2, L+2, C)
        a = slab * sc_ref[...] + sh_ref[...]
        a = jnp.where(a > 0, a, jnp.expm1(a))
        rowp = lax.broadcasted_iota(jnp.int32, (TI + 2, L + 2, 1), 0) + i * TI
        colp = lax.broadcasted_iota(jnp.int32, (TI + 2, L + 2, 1), 1)
        interior = (rowp >= 1) & (rowp <= L) & (colp >= 1) & (colp <= L)
        a = jnp.where(interior, a, 0.0).astype(BF16)

        acc = jnp.zeros((TI * L, Cout), F32) + b_ref[...]
        if has_res:
            acc = acc + res_ref[...].astype(F32)
        for di in range(3):
            for dj in range(3):
                patch = a[di:di + TI, dj:dj + L, :].reshape(TI * L, C)
                acc = acc + jnp.dot(patch, w_ref[di, dj], preferred_element_type=F32)
        o_ref[...] = acc.astype(o_ref.dtype)
    return kernel


def conv3x3(x, w, b, scale, shift, residual=None, out_dtype=BF16, row_tile=16):
    """3x3 'same' conv of ELU(IN_affine(x)), channel-last.  x: (L, L, C) RAW
    (pre-activation), w: (3,3,C,Cout).  Zero padding of the raw input is done
    once in XLA (bf16); the activation + halo-zeroing happen in-kernel."""
    L, _, C = x.shape
    Cout = w.shape[-1]
    TI = _pick_conv_tile(L, row_tile)
    xp = jnp.pad(x.astype(BF16), ((1, 1), (1, 1), (0, 0)))
    ins = [xp, w.astype(BF16), b.reshape(1, Cout).astype(F32),
           scale.reshape(1, 1, C).astype(F32), shift.reshape(1, 1, C).astype(F32)]
    specs = [pl.BlockSpec(memory_space=pl.ANY),
             _const_spec((3, 3, C, Cout)),
             _const_spec((1, Cout)),
             _const_spec((1, 1, C)),
             _const_spec((1, 1, C))]
    if residual is not None:
        ins.append(residual.reshape(L * L, Cout))
        specs.append(pl.BlockSpec((TI * L, Cout), lambda i: (i, 0)))
    out = pl.pallas_call(
        _get_conv3x3_kernel(TI, L, C, Cout, residual is not None),
        grid=(L // TI,),
        in_specs=specs,
        out_specs=pl.BlockSpec((TI * L, Cout), lambda i: (i, 0)),
        out_shape=jax.ShapeDtypeStruct((L * L, Cout), out_dtype),
        scratch_shapes=[pltpu.VMEM((2, TI + 2, L + 2, C), BF16),
                        pltpu.SemaphoreType.DMA((2,))],
        compiler_params=pltpu.CompilerParams(dimension_semantics=("arbitrary",)),
    )(*ins)
    return out.reshape(L, L, Cout)


# --------------------------------------------------------------------------
# Glue
# --------------------------------------------------------------------------
def symm(x):
    # TODO(synk): Symm('b i j d->b j i d') source not provided; assumed 0.5*(x + x^T).
    return 0.5 * (x + jnp.swapaxes(x, 1, 2))


# --------------------------------------------------------------------------
# Deterministic parameter construction
# --------------------------------------------------------------------------
class ParamGen:
    def __init__(self, seed=0):
        self._key = jax.random.PRNGKey(seed)

    def take(self, shape, scale=0.05):
        self._key, sub = jax.random.split(self._key)
        return scale * jax.random.normal(sub, shape, dtype=F32)


def p_linear(pg, din, dout):
    return {'w': pg.take((din, dout)), 'b': pg.take((dout,), 0.01)}


def p_norm(dim):
    return {'g': jnp.ones((dim,), F32), 'b': jnp.zeros((dim,), F32)}


def build_params(seed=0, dim=48, in_dim=47, layers_2d=2, heads=8, dim_head=64,
                 ffn_mult=4, opm_c=16, n_resnet=4):
    pg = ParamGen(seed)
    P = {}
    P['input'] = {'bn1': p_norm(in_dim),
                  'conv1': p_linear(pg, in_dim, dim),      # 1x1 conv == channel matmul
                  'token_emb': pg.take((5, dim))}
    # RecyclingEmbedder (its Linear(38, dim) is unused in the forward pass)
    P['recycle'] = {'norm_pair': p_norm(dim), 'norm_msa': p_norm(dim)}
    layers = []
    for _ in range(layers_2d):
        layers.append({
            'msa_attn': {'ln_m': p_norm(dim), 'ln_x': p_norm(dim),
                         'qkv': p_linear(pg, dim, 3 * heads * dim_head),   # fused Q|K|V
                         'bias': {'w': pg.take((dim, heads)), 'b': jnp.zeros((heads,), F32)},
                         'o': p_linear(pg, heads * dim_head, dim)},
            'msa_ffn': {'ln': p_norm(dim), 'l1': p_linear(pg, dim, ffn_mult * dim),
                        'l2': p_linear(pg, ffn_mult * dim, dim)},
            'opm': {'ln': p_norm(dim), 'ab': p_linear(pg, dim, 2 * opm_c),  # fused A|B
                    'o': p_linear(pg, opm_c * opm_c, dim)},
            'pair_attn': {'ln': p_norm(dim),
                          'qkv': p_linear(pg, dim, 3 * heads * dim_head),
                          'o': p_linear(pg, heads * dim_head, dim)},
            'pair_ffn': {'ln': p_norm(dim), 'l1': p_linear(pg, dim, ffn_mult * dim),
                         'l2': p_linear(pg, ffn_mult * dim, dim)},
        })
    P['net2d'] = {'relpos': p_linear(pg, 65, dim), 'layers': layers,
                  'heads': heads, 'dim_head': dim_head}
    P['to_dist'] = {
        'inorm': p_norm(dim),
        'distance': {a: p_linear(pg, dim, N_BINS_2D['distance']) for a in OBJ_2D['distance']},
        'contact': {a: p_linear(pg, dim, N_BINS_2D['contact']) for a in OBJ_2D['contact']},
    }
    P['to_ss'] = {'ln1': p_norm(dim), 'l1': p_linear(pg, dim, dim),
                  'l2': p_linear(pg, dim, dim), 'ln2': p_norm(dim),
                  'l3': p_linear(pg, dim, 1)}

    def resblock():
        return {'n1': p_norm(dim), 'c1_w': pg.take((3, 3, dim, dim)), 'c1_b': pg.take((dim,), 0.01),
                'n2': p_norm(dim), 'c2_w': pg.take((3, 3, dim, dim)), 'c2_b': pg.take((dim,), 0.01)}

    P['to_mask'] = {'blocks': [resblock() for _ in range(n_resnet)], 'out': p_linear(pg, dim, 1)}
    P['to_estogram'] = {'blocks': [resblock() for _ in range(n_resnet)], 'out': p_linear(pg, dim, 19)}
    return P


# --------------------------------------------------------------------------
# InputEmbedder (get_f2d statistics stay strictly f32)
# --------------------------------------------------------------------------
def get_f2d(msa_NL, ss_1LL):
    N, L = msa_NL.shape
    if N == 1:
        msa_NL = jnp.tile(msa_NL, (2, 1))
        N = 2
    msa1hot = (jnp.arange(5)[None, None, :] == msa_NL[..., None]).astype(F32)   # (N, L, 5)
    flat = msa1hot.reshape(N, L * 5)
    # reweight (f32: thresholding / statistics path)
    id_mtx = matmul(flat, flat.T)
    id_mask = id_mtx > (L * 0.8)
    w = 1.0 / id_mask.sum(axis=-1).astype(F32)
    # pssm
    f1d_seq = msa1hot[0, :, :4]
    beff = w.sum()
    f_i = (w[:, None, None] * msa1hot).sum(0) / beff + 1e-9
    h_i = (-f_i * jnp.log(f_i)).sum(axis=1)
    f1d = jnp.concatenate([f1d_seq, f_i, h_i[:, None]], axis=1)                 # (L, 10)
    # fast_dca
    num_points = w.sum() - jnp.sqrt(w.mean())
    mean = (flat * w[:, None]).sum(0, keepdims=True) / num_points
    xc = (flat - mean) * jnp.sqrt(w[:, None])
    cov = matmul(xc.T, xc) / num_points                                          # (5L, 5L), f32
    cov_reg = cov + jnp.eye(L * 5, dtype=F32) * 4.5 / jnp.sqrt(w.sum())
    # TODO(synk): torch.inverse has no Pallas primitive; matrix inverse stays in XLA.
    inv_cov = jnp.linalg.inv(cov_reg)
    x1 = inv_cov.reshape(L, 5, L, 5)
    x2 = jnp.transpose(x1, (0, 2, 1, 3))
    features = x2.reshape(L, L, 25)
    x3 = jnp.sqrt(jnp.square(x1[:, :-1, :, :-1]).sum((1, 3))) * (1.0 - jnp.eye(L, dtype=F32))
    apc = x3.sum(0, keepdims=True) * x3.sum(1, keepdims=True) / x3.sum()
    contacts = (x3 - apc) * (1.0 - jnp.eye(L, dtype=F32))
    f2d_dca = jnp.concatenate([features, contacts[:, :, None]], axis=2)          # (L, L, 26)
    f2d = jnp.concatenate([jnp.tile(f1d[:, None, :], (1, L, 1)),
                           jnp.tile(f1d[None, :, :], (L, 1, 1)),
                           f2d_dca], axis=-1).reshape(1, L, L, 46)
    return jnp.concatenate([f2d, ss_1LL[..., None].astype(F32)], axis=-1)        # (1, L, L, 47)


def input_embedder(p, msa_1NL, ss_1LL, msa_cutoff=500):
    f2d = get_f2d(msa_1NL[0], ss_1LL)
    # InstanceNorm2d(affine)+ELU fused into the 1x1-conv matmul as (scale, shift)+ELU.
    scale, shift = instnorm_affine(f2d, p['bn1'])
    pair = fused_linear(f2d, p['conv1']['w'], p['conv1']['b'], affine=(scale, shift),
                        out_dtype=BF16)
    m = jnp.take(p['token_emb'], msa_1NL[:, :msa_cutoff, :], axis=0).astype(BF16)  # (1, N, L, D)
    return {'pair': pair, 'msa': m}


# --------------------------------------------------------------------------
# RNAformer
# --------------------------------------------------------------------------
def basic_block(p, m, x, heads, dim_head):
    # TODO(synk): BasicBlock source is not provided; an Evoformer-style block
    # (MSA row attention w/ pair bias, MSA FFN, outer-product-mean, pair row
    # attention, pair FFN) is used with the module's (dim, heads, dim_head).
    B, N, L, D = m.shape
    H, dh = heads, dim_head
    Hdh = H * dh
    scale = dh ** -0.5

    # ---- MSA row attention with pair bias (fused LN + concatenated QKV) ----
    a = p['msa_attn']
    qkv = fused_linear(m, a['qkv']['w'], a['qkv']['b'], ln=a['ln_m'],
                       out_dtype=BF16)                                     # (1,N,L,3*H*dh)
    pb = fused_linear(x, a['bias']['w'], a['bias']['b'], ln=a['ln_x'],
                      out_dtype=BF16)[0]                                   # (L,L,H)
    pb = jnp.transpose(pb, (2, 0, 1))                                      # (H,L,L) shared over N
    o = attention(qkv.reshape(N, L, 3 * Hdh), H, dh, scale, bias=pb)       # (N,L,H*dh)
    m = fused_linear(o.reshape(1, N, L, Hdh), a['o']['w'], a['o']['b'],
                     residual=m, out_dtype=BF16)                           # residual fused

    # ---- MSA transition (one fused kernel) ----
    m = ffn_block(m, p['msa_ffn'], out_dtype=BF16)

    # ---- Outer-product-mean: MSA -> pair (direct (L*L, c*c) layout) ----
    o_ = p['opm']
    c = o_['ab']['w'].shape[-1] // 2
    ab = fused_linear(m, o_['ab']['w'], o_['ab']['b'], ln=o_['ln'],
                      out_dtype=BF16)[0]                                   # (N,L,2c)
    outer = opm_outer_mean(ab[..., :c], ab[..., c:])                       # (L*L, c*c) bf16
    x = fused_linear(outer, o_['o']['w'], o_['o']['b'], residual=x,
                     out_dtype=BF16).reshape(1, L, L, D)                   # projection+residual fused

    # ---- Pair row attention (no bias operand at all) ----
    a = p['pair_attn']
    qkv = fused_linear(x, a['qkv']['w'], a['qkv']['b'], ln=a['ln'],
                       out_dtype=BF16)                                     # (1,L,L,3*H*dh)
    o = attention(qkv.reshape(L, L, 3 * Hdh), H, dh, scale)                # (L,L,H*dh)
    x = fused_linear(o.reshape(1, L, L, Hdh), a['o']['w'], a['o']['b'],
                     residual=x, out_dtype=BF16)

    # ---- Pair transition ----
    x = ffn_block(x, p['pair_ffn'], out_dtype=BF16)
    return m, x


def rnaformer(p, x, m):
    L = x.shape[1]
    # TODO(synk): RelPos source not provided; clipped relative-position one-hot -> Linear.
    res_id = jnp.arange(L)
    rel = jnp.clip(res_id[:, None] - res_id[None, :], -32, 32) + 32
    rel_oh = jax.nn.one_hot(rel, 65, dtype=F32)
    x = fused_linear(rel_oh, p['relpos']['w'], p['relpos']['b'],
                     residual=x, out_dtype=BF16).reshape(x.shape)
    for lyr in p['layers']:
        m, x = basic_block(lyr, m, x, p['heads'], p['dim_head'])
    return x, m


# --------------------------------------------------------------------------
# Output heads
# --------------------------------------------------------------------------
def distogram_head(p, pair):
    B, L, _, D = pair.shape
    # InstanceNorm+ELU folded into ONE wide head matmul (all targets concatenated,
    # padded to a lane-dense multiple of 128 columns); Symm is applied after the
    # linear - exactly equivalent since Linear is affine.
    scale, shift = instnorm_affine(pair, p['inorm'])
    names = OBJ_2D['distance']
    cnames = OBJ_2D['contact']
    wcat = jnp.concatenate([p['distance'][a]['w'] for a in names] +
                           [p['contact'][a]['w'] for a in cnames], axis=1)
    bcat = jnp.concatenate([p['distance'][a]['b'] for a in names] +
                           [p['contact'][a]['b'] for a in cnames], axis=0)
    ncols = wcat.shape[1]
    ncols_p = _round_up(ncols, 128)
    if ncols_p > ncols:
        wcat = jnp.pad(wcat, ((0, 0), (0, ncols_p - ncols)))
        bcat = jnp.pad(bcat, ((0, ncols_p - ncols),))
    y = fused_linear(pair, wcat, bcat, affine=(scale, shift))    # (1, L, L, ncols_p)
    y = symm(y)
    nb = N_BINS_2D['distance']
    nd = len(names)
    dist = y[..., :nd * nb].reshape(L * L * nd, nb)
    probs = softmax_last(dist).reshape(L, L, nd, nb)
    geoms = {'distance': {}}
    for gi, name in enumerate(names):
        geoms['distance'][name] = probs[:, :, gi, :]                          # (L, L, 38)
    for ci, _name in enumerate(cnames):
        geoms['contact'] = jnp.squeeze(jax.nn.sigmoid(y[..., nd * nb + ci]))  # (L, L)
    return geoms


def to_ss_head(p, pair):
    h = fused_linear(pair, p['l1']['w'], p['l1']['b'], ln=p['ln1'])   # LN1 -> Linear1
    h = symm(h)                                                        # Symm
    h = fused_linear(h, p['l2']['w'], p['l2']['b'])                    # Linear2
    # ReLU -> LN2 -> Dropout(identity at inference) -> Linear3, fused in one kernel:
    return fused_linear(h, p['l3']['w'], p['l3']['b'], pre_relu=True, ln=p['ln2'])


def resnet_tower(blocks, pair):
    # TODO(synk): ResNetBlock source not provided; assumed
    #   x + Conv3x3(ELU(IN(Conv3x3(ELU(IN(x)))))) with constant channel count.
    B, L, _, C = pair.shape
    h = pair.reshape(L, L, C)
    for blk in blocks:
        sc, sh = instnorm_affine(h, blk['n1'])
        c1 = conv3x3(h, blk['c1_w'], blk['c1_b'], sc, sh)              # IN+ELU fused in kernel
        sc, sh = instnorm_affine(c1, blk['n2'])
        h = conv3x3(c1, blk['c2_w'], blk['c2_b'], sc, sh, residual=h)  # residual add fused
    return h.reshape(B, L, L, C)


def to_mask_head(p, pair):
    h = resnet_tower(p['blocks'], pair)
    y = fused_linear(h, p['out']['w'], p['out']['b'], pre_elu=True)    # ELU fused into matmul
    return jax.nn.sigmoid(symm(y))                                      # (1, L, L, 1)


def to_estogram_head(p, pair):
    h = resnet_tower(p['blocks'], pair)
    y = fused_linear(h, p['out']['w'], p['out']['b'], pre_elu=True)     # (1, L, L, 19)
    return softmax_last(symm(y))


# --------------------------------------------------------------------------
# DistPredictor forward
# --------------------------------------------------------------------------
def dist_predictor_forward(P, msa, ss, num_recycle=3, msa_cutoff=500):
    N, L = msa.shape[-2:]
    msa = msa.reshape(1, N, L)
    ss = ss.reshape(1, L, L)
    reprs_prev = None
    pair_repr = msa_repr = None
    for _c in range(1 + num_recycle):
        reprs = input_embedder(P['input'], msa, ss, msa_cutoff)
        if reprs_prev is None:
            reprs_prev = {'pair': jnp.zeros_like(reprs['pair']),
                          'single': jnp.zeros_like(reprs['msa'][:, 0])}
        rec_msa = layernorm(reprs_prev['single'], P['recycle']['norm_msa'], out_dtype=BF16)
        rec_pair = layernorm(reprs_prev['pair'], P['recycle']['norm_pair'], out_dtype=BF16)
        m = reprs['msa'] + rec_msa          # broadcast over MSA rows
        x = reprs['pair'] + rec_pair
        pair_repr, msa_repr = rnaformer(P['net2d'], x, m)
        reprs_prev = {'single': msa_repr[..., 0, :, :], 'pair': pair_repr}
        # TODO(synk): return_attn on the last cycle is unused by the outputs; omitted.
    outputs = {}
    outputs['geoms'] = distogram_head(P['to_dist'], pair_repr)
    outputs['contact_mask'] = to_mask_head(P['to_mask'], pair_repr)[..., 0]      # squeeze(-1)
    outputs['estogram'] = to_estogram_head(P['to_estogram'], pair_repr)
    outputs['ss'] = jax.nn.sigmoid(to_ss_head(P['to_ss'], pair_repr))
    return outputs


# --------------------------------------------------------------------------
if __name__ == "__main__":
    key = jax.random.PRNGKey(0)
    k1, k2 = jax.random.split(key)
    N, L = 4, 16                       # small MSA depth / sequence length
    msa = jax.random.randint(k1, (N, L), 0, 5, dtype=jnp.int32)
    ss = jax.random.uniform(k2, (L, L), dtype=jnp.float32)

    params = build_params(seed=0, dim=48, in_dim=47, layers_2d=2)   # shallow depth for the demo
    outputs = dist_predictor_forward(params, msa, ss, num_recycle=1)
    outputs = jax.block_until_ready(outputs)

    assert outputs['contact_mask'].shape == (1, L, L)
    assert outputs['estogram'].shape == (1, L, L, 19)
    assert outputs['ss'].shape == (1, L, L, 1)
    assert outputs['geoms']['distance']['PP'].shape == (L, L, N_BINS_2D['distance'])
    assert outputs['geoms']['contact'].shape == (L, L)
    print("KERNEL_OK")
</pallas_src>

<mosaic_0001>
module attributes {stable_mosaic.version = 11 : i64} {
  func.func @kernel(%arg0: i32, %arg1: i32, %arg2: memref<8x80xf32, #tpu.memory_space<vmem>>, %arg3: memref<80x128xf32, #tpu.memory_space<vmem>>, %arg4: memref<8x128xf32, #tpu.memory_space<vmem>>) attributes {dimension_semantics = [#tpu.dimension_semantics<parallel>, #tpu.dimension_semantics<parallel>], iteration_bounds = array<i64: 1, 1>, scalar_prefetch = 0 : i64, scratch_operands = 0 : i64, tpu.core_type = #tpu.core_type<tc>, window_params = [{transform_indices = @transform_0, window_bounds = array<i64: 8, 80>}, {transform_indices = @transform_1, window_bounds = array<i64: 80, 128>}, {transform_indices = @transform_2, window_bounds = array<i64: 8, 128>}]} {
    %c0 = arith.constant 0 : index
    %c0_0 = arith.constant 0 : index
    %0 = vector.load %arg2[%c0, %c0_0] : memref<8x80xf32, #tpu.memory_space<vmem>>, vector<8x80xf32>
    %c0_1 = arith.constant 0 : index
    %c0_2 = arith.constant 0 : index
    %1 = vector.load %arg3[%c0_1, %c0_2] : memref<80x128xf32, #tpu.memory_space<vmem>>, vector<80x128xf32>
    %cst = arith.constant dense<0.000000e+00> : vector<8x128xf32>
    %2 = tpu.matmul %0, %1, %cst {dimension_numbers = #tpu.dot_dimension_numbers<[1], [0], [0], [1], [0, 0, 1, 1], [], []>} : vector<8x80xf32>, vector<80x128xf32>, vector<8x128xf32> -> vector<8x128xf32>
    %c0_3 = arith.constant 0 : index
    %c0_4 = arith.constant 0 : index
    %3 = vector.load %arg4[%c0_3, %c0_4] : memref<8x128xf32, #tpu.memory_space<vmem>>, vector<8x128xf32>
    tpu.vector_store %arg4[%c0_3, %c0_4], %2 {strides = array<i32>} : memref<8x128xf32, #tpu.memory_space<vmem>>, vector<8x128xf32>,
    return
  }
  func.func @transform_0(%arg0: i32, %arg1: i32) -> (i32, i32) {
    %c0_i32 = arith.constant 0 : i32
    %c0_i32_0 = arith.constant 0 : i32
    return %arg0, %c0_i32 : i32, i32
  }
  func.func @transform_1(%arg0: i32, %arg1: i32) -> (i32, i32) {
    %c0_i32 = arith.constant 0 : i32
    %c0_i32_0 = arith.constant 0 : i32
    return %c0_i32, %arg1 : i32, i32
  }
  func.func @transform_2(%arg0: i32, %arg1: i32) -> (i32, i32) {
    %c0_i32 = arith.constant 0 : i32
    return %arg0, %arg1 : i32, i32
  }
}

</mosaic_0001>

<bundles_post_ra>
// kernel: tpu_custom_call.1
= control target key start
LH: loop header
LB: loop body
LE: loop exit
PB: predicated region body
PF: predicated region fallthrough
CT: control target
= control target key end

     0   :  { %7 = vsyncpa [#allocation3], 0  ;;  %s209_s0 = inlined_call_operand.hbm [shape: f32[8,80], index: 0, kind: input, shape index: {}]   ;;  %s210_s1 = inlined_call_operand.hbm [shape: f32[80,128], index: 1, kind: input, shape index: {}]   ;;  %s211_s2 = inlined_call_operand.hbm [shape: f32[8,128], index: 2, kind: output, shape index: {}]  }
   0x1   :  { %8 = vsyncpa [#allocation6], 0 }
   0x2   :  { %9 = vsyncpa [#allocation4], 0  ;;  %s15_s11 = sshll.u32 %s209_s0, 4  ;;  %s180_s12 = smov [#allocation2]   ;;  %s16_s11 = int_to_ptr.hbm [resolvable:$true] %s15_s11 }
   0x3   :  { %s17_s13 = sshll.u32 %s180_s12, 4  ;;  %s25_s16 = sshll.u32 %s210_s1, 4  ;;  %s18_s13 = int_to_ptr.vmem [resolvable:$true] %s17_s13  ;;  %s26_s16 = int_to_ptr.hbm [resolvable:$true] %s25_s16 }
   0x4   :  { %20 = dma.hbm_to_vmem [thread:$0]  %s16_s11, 128, %s18_s13, [#allocation3]  }
   0x5   :  { %s181_s17 = smov [#allocation5]   ;;  %s182_s19 = smov 128  }
   0x6   :  { %s27_s18 = sshll.u32 %s181_s17, 4  ;;  %s183_s20 = smov 8   ;;  %s28_s18 = int_to_ptr.vmem [resolvable:$true] %s27_s18 }
   0x7   :  { %33 = dma.hbm_to_vmem [thread:$0]  %s26_s16, 1280, %s28_s18, [#allocation6], %s182_s19, %s182_s19, %s183_s20  }
   0x8   :  { %174 = dma.done.wait [#allocation3], 128  }
   0x9   :  { %175 = vsyncadd [#allocation3], 4294967168 }
   0xa   :  { %176 = dma.done.wait [#allocation6], 1280  }
   0xb   :  { %177 = vsyncadd [#allocation6], 4294966016  ;;  %v52_v0 = vld [vmem:[#allocation5 + $0x48] sm:$0xff]  ;;  %v51_v1 = vld [vmem:[#allocation5 + $0x40] sm:$0xff]  ;;  %vm53_vm0 = vcmask 654336   ;;  %s184_s0 = smov [#allocation7]  }
   0xc   :  { %63 = vmatpush.msra.mxu0 %v52_v0  ;;  %v50_v2 = vld [vmem:[#allocation5 + $0x38] sm:$0xff]  ;;  %v49_v3 = vld [vmem:[#allocation5 + $0x30] sm:$0xff]  ;;  %v48_v4 = vld [vmem:[#allocation5 + $0x28] sm:$0xff]  ;;  %s83_s1 = sshll.u32 %s184_s0, 4  ;;  %s85_s23 = sshll.u32 %s211_s2, 4  ;;  %s84_s1 = int_to_ptr.vmem [resolvable:$true] %s83_s1  ;;  %s86_s23 = int_to_ptr.hbm [resolvable:$true] %s85_s23 }
   0xd   :  { %v47_v5 = vld [vmem:[#allocation5 + $0x20] sm:$0xff]  ;;  %v46_v6 = vld [vmem:[#allocation5 + $0x18] sm:$0xff]  ;;  %v45_v7 = vld [vmem:[#allocation5 + $0x10] sm:$0xff] }
   0xe   :  { %64 = vmatpush.msra.mxu0 %v51_v1  ;;  %v44_v8 = vld [vmem:[#allocation5 + $0x8] sm:$0xff]  ;;  %v43_v9 = vld [vmem:[#allocation5] sm:$0xff]  ;;  %v42_v10 = vld [vmem:[#allocation2] sm:$0xff] }
  0x10   :  { %65 = vmatpush.msra.mxu0 %v50_v2 }
  0x12   :  { %66 = vmatpush.msra.mxu0 %v49_v3 }
  0x14   :  { %67 = vmatpush.msra.mxu0 %v48_v4 }
  0x16   :  { %68 = vmatpush.msra.mxu0 %v47_v5 }
  0x18   :  { %69 = vmatpush.msra.mxu0 %v46_v6 }
  0x1a   :  { %70 = vmatpush.msra.mxu0 %v45_v7 }
  0x1c   :  { %71 = vmatpush.msra.mxu0 %v44_v8 }
  0x1e   :  { %72 = vmatpush.msra.mxu0 %v43_v9 }
  0x1f   :  { %96 = vmatmul.msk.f32.vlgmr.msra.gmra.mxu0 %vm53_vm0, %v42_v10 }
  0x9c   :  { %v74_v11 = vpop.f32.mrf.mxu0 }
  0x9d   :  { %77 = vst [vmem:[#allocation7] sm:$0xff] %v74_v11 }
  0x9e   :  { %88 = dma.vmem_to_hbm [thread:$0]  %s84_s1, 128, %s86_s23, [#allocation4]  }
  0x9f   :  { %178 = dma.done.wait [#allocation4], 128  }
  0xa0   :  { %179 = vsyncadd [#allocation4], 4294967168 }
  0xa1   :  { %93 = vsyncpa [#allocation3], 1 }
  0xa2   :  { %94 = vsyncpa [#allocation6], 1 }
  0xa3   :  { %95 = vsyncpa [#allocation4], 1 }

</bundles_post_ra>
